<compile_context>
chip_gen: v6e
topology: v6e:2x2x1
jax: 0.10.0
libtpu: 0.0.40
codegen_flags: <defaults>
</compile_context>

<pallas_src>
import functools

import jax
import jax.numpy as jnp
from jax.experimental import pallas as pl
from jax.experimental.pallas import tpu as pltpu


def _attention_mask_kernel(x_ref, o_ref, *, scale):
    # x_ref: (tile_r, HW) block in VMEM
    xf = x_ref[...].astype(jnp.float32)
    # f32 accumulation of the spatial sum (per row == per (n, c) pair)
    xsum = jnp.sum(xf, axis=-1, keepdims=True)          # (tile_r, 1)
    # Fold divide + scale into one tiny per-row scalar (exact, keeps rtol=1e-5),
    # then a single full-tile multiply on the VPU.
    inv = scale / xsum                                   # (tile_r, 1) column op
    o_ref[...] = (xf * inv).astype(o_ref.dtype)


def _pick_tile_rows(R: int, HW: int, dtype) -> int:
    """Byte-budget-driven, sublane-aligned row tile."""
    dtype_bytes = jnp.dtype(dtype).itemsize
    # sublane packing granularity: 8 for 32-bit, 16 for bf16/fp16, 32 for int8/fp8
    sublane = max(8, 32 // max(1, dtype_bytes))
    if R <= sublane:
        # Full first dim is always a legal block shape.
        return R
    # ~4 MiB per block: large enough to sit near the HBM roofline, small enough
    # that double-buffered in+out blocks (~4x this) stay well inside the
    # requested 32 MiB scoped VMEM on every generation (v5e/v6e/v7x).
    target_bytes = 4 * 1024 * 1024
    rows_budget = target_bytes // max(1, HW * dtype_bytes)
    tile_r = min(R, max(sublane, rows_budget))
    tile_r = (tile_r // sublane) * sublane
    return max(sublane, tile_r)
    # TODO(synk): if HW alone exceeds the VMEM budget (enormous spatial maps,
    # not the NTSCAN regime), split HW across a trailing "arbitrary" grid axis
    # with a two-pass sum-then-scale scheme instead of this single pass.


def attention_mask(x: jax.Array) -> jax.Array:
    """Pallas TPU equivalent of Attention_mask.forward for NCHW input."""
    N, C, H, W = x.shape
    R = N * C
    HW = H * W
    scale = float(H) * float(W) * 0.5

    x2d = x.reshape(R, HW)

    tile_r = _pick_tile_rows(R, HW, x.dtype)
    grid = (pl.cdiv(R, tile_r),)

    kernel = functools.partial(_attention_mask_kernel, scale=scale)

    out2d = pl.pallas_call(
        kernel,
        out_shape=jax.ShapeDtypeStruct((R, HW), x.dtype),
        grid_spec=pltpu.PrefetchScalarGridSpec(
            num_scalar_prefetch=0,
            grid=grid,
            in_specs=[pl.BlockSpec((tile_r, HW), lambda i: (i, 0))],
            out_specs=pl.BlockSpec((tile_r, HW), lambda i: (i, 0)),
        ),
        compiler_params=pltpu.CompilerParams(
            dimension_semantics=("parallel",),
            # Raise v5e's 16 MiB scoped default; double-buffered ~4 MiB blocks
            # (in + out) use ~16 MiB, leaving headroom even on v7x (64 MiB
            # physical VMEM).
            vmem_limit_bytes=32 * 1024 * 1024,
        ),
    )(x2d)

    return out2d.reshape(N, C, H, W)


def _reference(x: jax.Array) -> jax.Array:
    xsum = jnp.sum(x, axis=2, keepdims=True)
    xsum = jnp.sum(xsum, axis=3, keepdims=True)
    H, W = x.shape[2], x.shape[3]
    return x / xsum * H * W * 0.5


if __name__ == "__main__":
    key = jax.random.PRNGKey(0)
    N, C, H, W = 2, 4, 16, 16
    # positive values (attention-mask style input) to avoid zero spatial sums
    x = jax.random.uniform(key, (N, C, H, W), dtype=jnp.float32) + 0.1

    out = attention_mask(x)
    out = jax.block_until_ready(out)

    ref = _reference(x)
    assert out.shape == (N, C, H, W)
    assert out.dtype == x.dtype
    assert jnp.allclose(out, ref, rtol=1e-5, atol=1e-5), "mismatch vs reference"

    print("KERNEL_OK")
</pallas_src>

<mosaic_0001>
module attributes {stable_mosaic.version = 11 : i64} {
  func.func @_attention_mask_kernel(%arg0: i32, %arg1: memref<8x256xf32, #tpu.memory_space<vmem>>, %arg2: memref<8x256xf32, #tpu.memory_space<vmem>>) attributes {dimension_semantics = [#tpu.dimension_semantics<parallel>], iteration_bounds = array<i64: 1>, scalar_prefetch = 0 : i64, scratch_operands = 0 : i64, tpu.core_type = #tpu.core_type<tc>, window_params = [{transform_indices = @transform_0, window_bounds = array<i64: 8, 256>}, {transform_indices = @transform_1, window_bounds = array<i64: 8, 256>}]} {
    %c0 = arith.constant 0 : index
    %c0_0 = arith.constant 0 : index
    %0 = vector.load %arg1[%c0, %c0_0] : memref<8x256xf32, #tpu.memory_space<vmem>>, vector<8x256xf32>
    %cst = arith.constant dense<0.000000e+00> : vector<8xf32>
    %1 = vector.multi_reduction <add>, %0, %cst [1] : vector<8x256xf32> to vector<8xf32>
    %2 = vector.shape_cast %1 : vector<8xf32> to vector<8x1xf32>
    %cst_1 = arith.constant 1.280000e+02 : f32
    %3 = vector.broadcast %cst_1 : f32 to vector<8x1xf32>
    %4 = arith.divf %3, %2 : vector<8x1xf32>
    %5 = vector.broadcast %4 : vector<8x1xf32> to vector<8x256xf32>
    %6 = arith.mulf %0, %5 : vector<8x256xf32>
    %c0_2 = arith.constant 0 : index
    %c0_3 = arith.constant 0 : index
    %7 = vector.load %arg2[%c0_2, %c0_3] : memref<8x256xf32, #tpu.memory_space<vmem>>, vector<8x256xf32>
    tpu.vector_store %arg2[%c0_2, %c0_3], %6 {strides = array<i32>} : memref<8x256xf32, #tpu.memory_space<vmem>>, vector<8x256xf32>,
    return
  }
  func.func @transform_0(%arg0: i32) -> (i32, i32) {
    %c0_i32 = arith.constant 0 : i32
    %c0_i32_0 = arith.constant 0 : i32
    return %arg0, %c0_i32 : i32, i32
  }
  func.func @transform_1(%arg0: i32) -> (i32, i32) {
    %c0_i32 = arith.constant 0 : i32
    %c0_i32_0 = arith.constant 0 : i32
    return %arg0, %c0_i32 : i32, i32
  }
}

</mosaic_0001>

<bundles_post_ra>
// kernel: tpu_custom_call.1
= control target key start
LH: loop header
LB: loop body
LE: loop exit
PB: predicated region body
PF: predicated region fallthrough
CT: control target
= control target key end

     0   :  { %6 = vsyncpa [#allocation3], 0  ;;  %s113_s0 = inlined_call_operand.hbm [shape: f32[8,256], index: 0, kind: input, shape index: {}]   ;;  %s114_s1 = inlined_call_operand.hbm [shape: f32[8,256], index: 1, kind: output, shape index: {}]  }
   0x1   :  { %7 = vsyncpa [#allocation4], 0  ;;  %s95_s6 = smov [#allocation2]  }
   0x2   :  { %s14_s7 = sshll.u32 %s95_s6, 4  ;;  %s15_s7 = int_to_ptr.vmem [resolvable:$true] %s14_s7 }
   0x3   :  { %s59_s8 = scalar_lea.vmem %s15_s7, 256  ;;  %p64_p1 = scmp.lt.s32.totalorder %s15_s7, %s15_s7 }
   0x4   :  { %p60_p0 = scmp.ne.s32.totalorder %s15_s7, %s59_s8  ;;  %p65_p2 = scmp.lt.s32.totalorder %s59_s8, %s59_s8 }
   0x6   :  { %p66_p3 = por %p65_p2, %p64_p1 }
   0x8   :  { %p67_p4 = pnand %p66_p3, %p60_p0 }
   0xa   :  { %70 = shalt.err (!%p67_p4)
}
   0xb   :  { %17 = dma.hbm_to_vmem [thread:$0]  %s113_s0, 256, %s15_s7, [#allocation3]  }
   0xc   :  { %91 = dma.done.wait [#allocation3], 256  }
   0xd   :  { %92 = vsyncadd [#allocation3], 4294967040  ;;  %v21_v0 = vld [vmem:[#allocation2] sm:$0xff]  ;;  %v22_v1 = vld [vmem:[#allocation2 + $0x8] sm:$0xff]  ;;  %s96_s11 = smov [#allocation5]  }
   0xe   :  { %v23_v2 = vadd.f32 %v22_v1, %v21_v0  ;;  %s38_s12 = sshll.u32 %s96_s11, 4  ;;  %s39_s12 = int_to_ptr.vmem [resolvable:$true] %s38_s12 }
   0xf   :  { %s71_s13 = scalar_lea.vmem %s39_s12, 256  ;;  %p76_p6 = scmp.lt.s32.totalorder %s39_s12, %s39_s12 }
  0x10   :  { %24 = vadd.xlane.f32.xlu0 %v23_v2  ;;  %p72_p5 = scmp.ne.s32.totalorder %s39_s12, %s71_s13  ;;  %p77_p7 = scmp.lt.s32.totalorder %s71_s13, %s71_s13 }
  0x12   :  { %p78_p8 = por %p77_p7, %p76_p6 }
  0x14   :  { %p79_p9 = pnand %p78_p8, %p72_p5 }
  0x99   :  { %v25_v3 = vpop.xlane.xlu0 %24 }
  0x9a   :  { %49 = vrcp.f32 %v25_v3 }
  0xa7   :  { %v50_v4 = vpop.eup %49 }
  0xa8   :  { %v27_v5 = vmul.f32 128.0, %v50_v4 }
  0xaa   :  { %v28_v6 = vmul.f32 %v27_v5, %v21_v0  ;;  %v29_v7 = vmul.f32 %v27_v5, %v22_v1 }
  0xac   :  { %30 = vst [vmem:[#allocation5] sm:$0xff] %v28_v6  ;;  %31 = vst [vmem:[#allocation5 + $0x8] sm:$0xff] %v29_v7 }
  0xad   :  { %82 = shalt.err (!%p79_p9)
}
  0xae   :  { %41 = dma.vmem_to_hbm [thread:$0]  %s39_s12, 256, %s114_s1, [#allocation4]  }
  0xaf   :  { %93 = dma.done.wait [#allocation4], 256  }
  0xb0   :  { %94 = vsyncadd [#allocation4], 4294967040 }
  0xb1   :  { %45 = vsyncpa [#allocation3], 1 }
  0xb2   :  { %46 = vsyncpa [#allocation4], 1 }

</bundles_post_ra>
